<compile_context>
chip_gen: v5e
topology: v5e:2x2
jax: 0.10.0
libtpu: 0.0.40
codegen_flags: <defaults>
</compile_context>

<pallas_src>
import functools

import jax
import jax.numpy as jnp
from jax.experimental import pallas as pl
from jax.experimental.pallas import tpu as pltpu

SCALE = 0.5 ** 0.5  # sqrt(0.5) residual scale (matches torch.sqrt(FloatTensor([0.5])))

# small hedge for older jax versions where CompilerParams had the TPU-prefixed name
_CompilerParams = getattr(pltpu, "CompilerParams", None) or getattr(pltpu, "TPUCompilerParams")


# ------------------------------ Pallas kernel -------------------------------


def _encoder_conv_glu_kernel(xp_ref, xres_ref, w_ref, b_ref, o_ref, *, k, pad, scale):
    """Fused K-tap conv (shifted wide matmuls) -> GLU -> (. + residual) * scale.

    xp_ref  : (Lp, C_in)       f32   zero-padded activations, full channels (resident per batch)
    xres_ref: (Lp, tn)         f32   SAME padded activations, channel tile n (residual source)
    w_ref   : (k, C_in, 2*tn)  bf16  conv weight, tap-major, last dim = [GLU 'a' tile | gate tile]
    b_ref   : (1, 2*tn)        f32   bias, same [a | gate] interleaving
    o_ref   : (tm, tn)         f32   output tile (channels-last)
    """
    tm, tn = o_ref.shape
    row0 = pl.multiple_of(pl.program_id(2) * tm, tm)          # seq-tile row offset

    # bias-as-init: no separate (tm, 2*tn) bias add in the epilogue (opt #11)
    acc = jnp.broadcast_to(b_ref[...], (tm, 2 * tn)).astype(jnp.float32)

    # static unroll over taps -> k wide bf16 MXU matmuls, f32 accumulation (opt #1)
    for j in range(k):
        x_j = xp_ref[pl.ds(row0 + j, tm), :].astype(jnp.bfloat16)   # (tm, C_in) shifted window
        acc = acc + jnp.dot(x_j, w_ref[j], preferred_element_type=jnp.float32)

    # GLU: slice the fused accumulator at the lane-aligned tn boundary
    gated = acc[:, :tn] * jax.nn.sigmoid(acc[:, tn:])

    # exact f32 residual read from the (shared) padded activation buffer (opt #3)
    res = xres_ref[pl.ds(row0 + pad, tm), :]
    o_ref[...] = ((gated + res) * scale).astype(o_ref.dtype)


# ------------------------------ host wrapper --------------------------------


def _pick_tile(dim, candidates):
    # Falls back to the full dim when nothing divides (legal: block == array dim),
    # at the cost of lane-/sublane-sparse (masked) layouts.
    for c in candidates:
        if dim % c == 0:
            return c
    return dim


def _vmem_limit_bytes(*per_buffer_bytes):
    """Footprint-derived VMEM request (opt #4): footprint + headroom, per-chip capped."""
    need = int(sum(per_buffer_bytes))
    limit = need + (16 << 20)                 # headroom for compiler scratch / semaphores
    cap = 100 << 20                           # below 128 MiB physical on v5e / v6e
    try:  # pragma: no cover - depends on runtime / jax version
        cap = min(cap, int(pltpu.get_tpu_info().vmem_capacity_bytes) * 7 // 8)  # ~56 MiB on v7x
    except Exception:
        pass
    return max(32 << 20, min(limit, cap))


@jax.jit
def encoder_conv_forward(conv_input, weight, bias):
    """EncoderConv.forward (inference; dropout = identity).

    conv_input: (B, C_in, L) f32      (PyTorch Conv1d NCL layout)
    weight    : (C_out, C_in, K) f32  PyTorch Conv1d weight, C_out == 2*C_in
    bias      : (C_out,) f32
    returns   : (B, C_in, L) f32
    """
    B, C_in, L = conv_input.shape
    C_out, C_in_w, K = weight.shape
    assert C_in_w == C_in
    assert C_out == 2 * C_in, "GLU halves channels; residual requires out_channels == 2*in_channels"
    H = C_out // 2
    pad = (K - 1) // 2  # 'same' padding (module default padding=1 with K=3); required by the residual
    Lp = L + 2 * pad

    # ONE derived activation array: channels-last, zero-padded, f32 (exact residual source;
    # bf16 cast for the MXU happens in-kernel).
    x_pad = jnp.pad(jnp.transpose(conv_input, (0, 2, 1)).astype(jnp.float32),
                    ((0, 0), (pad, pad), (0, 0)))                            # (B, Lp, C_in)

    # lane-aligned channel / seq tiles (opts #2, #9)
    tn = _pick_tile(H, (512, 256, 128))
    tm = _pick_tile(L, (256, 128, 64, 32, 16, 8))
    n_tiles = H // tn if H % tn == 0 else 1
    grid = (B, n_tiles, L // tm if L % tm == 0 else 1)   # seq innermost: weights & acts stay resident

    # Fused GLU conv weight, tap-major, tile-interleaved along the output-channel axis:
    # for channel tile n, columns [n*2tn, n*2tn+tn) = 'a' half, [n*2tn+tn, (n+1)*2tn) = gate half.
    w_a = jnp.transpose(weight[:H], (2, 1, 0))                               # (K, C_in, H)
    w_b = jnp.transpose(weight[H:], (2, 1, 0))                               # (K, C_in, H)
    w_fused = jnp.concatenate(
        [w_a.reshape(K, C_in, n_tiles, 1, tn), w_b.reshape(K, C_in, n_tiles, 1, tn)],
        axis=3).reshape(K, C_in, 2 * H).astype(jnp.bfloat16)
    b_fused = jnp.concatenate(
        [bias[:H].reshape(n_tiles, 1, tn), bias[H:].reshape(n_tiles, 1, tn)],
        axis=1).reshape(1, 2 * H).astype(jnp.float32)

    vmem_limit = _vmem_limit_bytes(
        2 * Lp * C_in * 4,            # resident padded acts (double-buffered)
        2 * Lp * tn * 4,              # residual channel slab
        2 * K * C_in * 2 * tn * 2,    # fused bf16 weight tile
        2 * 2 * tn * 4,               # bias tile
        2 * tm * tn * 4,              # output tile
        2 * tm * 2 * tn * 4,          # f32 accumulator + epilogue temps (SSA -> VMEM)
    )

    kern = functools.partial(_encoder_conv_glu_kernel, k=K, pad=pad, scale=float(SCALE))
    out_nlc = pl.pallas_call(
        kern,
        grid=grid,
        in_specs=[
            pl.BlockSpec((None, Lp, C_in), lambda bi, n, m: (bi, 0, 0)),   # padded acts (resident per batch)
            pl.BlockSpec((None, Lp, tn), lambda bi, n, m: (bi, 0, n)),     # same array, residual channel tile
            pl.BlockSpec((K, C_in, 2 * tn), lambda bi, n, m: (0, 0, n)),   # fused [a|gate] weight tile
            pl.BlockSpec((1, 2 * tn), lambda bi, n, m: (0, n)),            # fused bias tile
        ],
        out_specs=pl.BlockSpec((None, tm, tn), lambda bi, n, m: (bi, m, n)),
        out_shape=jax.ShapeDtypeStruct((B, L, H), jnp.float32),
        compiler_params=_CompilerParams(
            # every grid point is independent -> all-parallel (megacore can shard any axis)
            dimension_semantics=("parallel", "parallel", "parallel"),
            vmem_limit_bytes=vmem_limit,
        ),
    )(x_pad, x_pad, w_fused, b_fused)

    return jnp.transpose(out_nlc, (0, 2, 1))                # back to (B, C_in, L)


# ------------------------------ f32 reference -------------------------------


def encoder_conv_reference(conv_input, weight, bias, scale=SCALE):
    """Pure-JAX f32 reference of EncoderConv.forward (conv -> GLU -> residual * sqrt(0.5))."""
    B, C_in, L = conv_input.shape
    C_out, _, K = weight.shape
    H = C_out // 2
    pad = (K - 1) // 2
    x = jnp.transpose(conv_input, (0, 2, 1))                               # (B, L, C_in)
    xp = jnp.pad(x, ((0, 0), (pad, pad), (0, 0)))
    acc = jnp.broadcast_to(bias, (B, L, C_out)).astype(jnp.float32)
    for j in range(K):
        acc = acc + jnp.einsum("blc,oc->blo", xp[:, j:j + L, :], weight[:, :, j])
    glu = acc[..., :H] * jax.nn.sigmoid(acc[..., H:])
    out = (glu + x) * scale
    return jnp.transpose(out, (0, 2, 1))


# ---------------------------------- main -------------------------------------

if __name__ == "__main__":
    # Small but lane-aligned shapes consistent with the module (C_out == 2 * C_in).
    B, C_IN, L, K = 2, 128, 16, 3
    C_OUT = 2 * C_IN

    key = jax.random.PRNGKey(0)
    kx, kw, kb = jax.random.split(key, 3)
    conv_input = jax.random.normal(kx, (B, C_IN, L), jnp.float32)
    weight = jax.random.normal(kw, (C_OUT, C_IN, K), jnp.float32) * 0.05
    bias = jax.random.normal(kb, (C_OUT,), jnp.float32) * 0.05

    out = encoder_conv_forward(conv_input, weight, bias)
    out = jax.block_until_ready(out)
    assert out.shape == (B, C_IN, L), out.shape

    ref = encoder_conv_reference(conv_input, weight, bias)
    max_err = float(jnp.max(jnp.abs(out - ref)))
    assert max_err < 5e-2, f"max abs error vs f32 reference: {max_err}"

    print("KERNEL_OK")
</pallas_src>

<mosaic_0001>
module attributes {stable_mosaic.version = 11 : i64} {
  func.func @_encoder_conv_glu_kernel(%arg0: i32, %arg1: i32, %arg2: i32, %arg3: memref<1x18x128xf32, #tpu.memory_space<vmem>>, %arg4: memref<1x18x128xf32, #tpu.memory_space<vmem>>, %arg5: memref<3x128x256xbf16, #tpu.memory_space<vmem>>, %arg6: memref<1x256xf32, #tpu.memory_space<vmem>>, %arg7: memref<1x16x128xf32, #tpu.memory_space<vmem>>) attributes {dimension_semantics = [#tpu.dimension_semantics<parallel>, #tpu.dimension_semantics<parallel>, #tpu.dimension_semantics<parallel>], iteration_bounds = array<i64: 2, 1, 1>, scalar_prefetch = 0 : i64, scratch_operands = 0 : i64, tpu.core_type = #tpu.core_type<tc>, window_params = [{transform_indices = @transform_0, window_bounds = array<i64: 1, 18, 128>}, {transform_indices = @transform_1, window_bounds = array<i64: 1, 18, 128>}, {transform_indices = @transform_2, window_bounds = array<i64: 3, 128, 256>}, {transform_indices = @transform_3, window_bounds = array<i64: 1, 256>}, {transform_indices = @transform_4, window_bounds = array<i64: 1, 16, 128>}]} {
    %c16_i32 = arith.constant 16 : i32
    %0 = arith.muli %arg2, %c16_i32 : i32
    %1 = tpu.assume_multiple %0, 16 : i32
    %c0 = arith.constant 0 : index
    %c0_0 = arith.constant 0 : index
    %2 = vector.load %arg6[%c0, %c0_0] : memref<1x256xf32, #tpu.memory_space<vmem>>, vector<1x256xf32>
    %3 = vector.shape_cast %2 : vector<1x256xf32> to vector<1x256xf32>
    %4 = vector.broadcast %3 : vector<1x256xf32> to vector<16x256xf32>
    %c0_i32 = arith.constant 0 : i32
    %5 = arith.addi %1, %c0_i32 : i32
    %c0_1 = arith.constant 0 : index
    %6 = arith.index_cast %5 : i32 to index
    %c0_2 = arith.constant 0 : index
    %7 = vector.load %arg3[%c0_1, %6, %c0_2] : memref<1x18x128xf32, #tpu.memory_space<vmem>>, vector<1x16x128xf32>
    %8 = vector.shape_cast %7 : vector<1x16x128xf32> to vector<16x128xf32>
    %9 = arith.truncf %8 : vector<16x128xf32> to vector<16x128xbf16>
    %c0_3 = arith.constant 0 : index
    %c0_4 = arith.constant 0 : index
    %c0_5 = arith.constant 0 : index
    %10 = vector.load %arg5[%c0_3, %c0_4, %c0_5] : memref<3x128x256xbf16, #tpu.memory_space<vmem>>, vector<1x128x256xbf16>
    %11 = vector.shape_cast %10 : vector<1x128x256xbf16> to vector<128x256xbf16>
    %cst = arith.constant dense<0.000000e+00> : vector<16x256xf32>
    %12 = tpu.matmul %9, %11, %cst {dimension_numbers = #tpu.dot_dimension_numbers<[1], [0], [0], [1], [0, 0, 1, 1], [], []>} : vector<16x128xbf16>, vector<128x256xbf16>, vector<16x256xf32> -> vector<16x256xf32>
    %13 = arith.addf %4, %12 : vector<16x256xf32>
    %c1_i32 = arith.constant 1 : i32
    %14 = arith.addi %1, %c1_i32 : i32
    %c0_6 = arith.constant 0 : index
    %15 = arith.index_cast %14 : i32 to index
    %c0_7 = arith.constant 0 : index
    %16 = vector.load %arg3[%c0_6, %15, %c0_7] : memref<1x18x128xf32, #tpu.memory_space<vmem>>, vector<1x16x128xf32>
    %17 = vector.shape_cast %16 : vector<1x16x128xf32> to vector<16x128xf32>
    %18 = arith.truncf %17 : vector<16x128xf32> to vector<16x128xbf16>
    %c1 = arith.constant 1 : index
    %c0_8 = arith.constant 0 : index
    %c0_9 = arith.constant 0 : index
    %19 = vector.load %arg5[%c1, %c0_8, %c0_9] : memref<3x128x256xbf16, #tpu.memory_space<vmem>>, vector<1x128x256xbf16>
    %20 = vector.shape_cast %19 : vector<1x128x256xbf16> to vector<128x256xbf16>
    %cst_10 = arith.constant dense<0.000000e+00> : vector<16x256xf32>
    %21 = tpu.matmul %18, %20, %cst_10 {dimension_numbers = #tpu.dot_dimension_numbers<[1], [0], [0], [1], [0, 0, 1, 1], [], []>} : vector<16x128xbf16>, vector<128x256xbf16>, vector<16x256xf32> -> vector<16x256xf32>
    %22 = arith.addf %13, %21 : vector<16x256xf32>
    %c2_i32 = arith.constant 2 : i32
    %23 = arith.addi %1, %c2_i32 : i32
    %c0_11 = arith.constant 0 : index
    %24 = arith.index_cast %23 : i32 to index
    %c0_12 = arith.constant 0 : index
    %25 = vector.load %arg3[%c0_11, %24, %c0_12] : memref<1x18x128xf32, #tpu.memory_space<vmem>>, vector<1x16x128xf32>
    %26 = vector.shape_cast %25 : vector<1x16x128xf32> to vector<16x128xf32>
    %27 = arith.truncf %26 : vector<16x128xf32> to vector<16x128xbf16>
    %c2 = arith.constant 2 : index
    %c0_13 = arith.constant 0 : index
    %c0_14 = arith.constant 0 : index
    %28 = vector.load %arg5[%c2, %c0_13, %c0_14] : memref<3x128x256xbf16, #tpu.memory_space<vmem>>, vector<1x128x256xbf16>
    %29 = vector.shape_cast %28 : vector<1x128x256xbf16> to vector<128x256xbf16>
    %cst_15 = arith.constant dense<0.000000e+00> : vector<16x256xf32>
    %30 = tpu.matmul %27, %29, %cst_15 {dimension_numbers = #tpu.dot_dimension_numbers<[1], [0], [0], [1], [0, 0, 1, 1], [], []>} : vector<16x128xbf16>, vector<128x256xbf16>, vector<16x256xf32> -> vector<16x256xf32>
    %31 = arith.addf %22, %30 : vector<16x256xf32>
    %32 = vector.extract_strided_slice %31 {offsets = [0, 0], sizes = [16, 128], strides = [1, 1]} : vector<16x256xf32> to vector<16x128xf32>
    %33 = vector.extract_strided_slice %31 {offsets = [0, 128], sizes = [16, 128], strides = [1, 1]} : vector<16x256xf32> to vector<16x128xf32>
    %34 = arith.negf %33 : vector<16x128xf32>
    %35 = math.exp %34 : vector<16x128xf32>
    %cst_16 = arith.constant 1.000000e+00 : f32
    %36 = vector.broadcast %cst_16 : f32 to vector<16x128xf32>
    %37 = arith.addf %36, %35 : vector<16x128xf32>
    %38 = arith.divf %36, %37 : vector<16x128xf32>
    %39 = arith.mulf %32, %38 : vector<16x128xf32>
    %c1_i32_17 = arith.constant 1 : i32
    %40 = arith.addi %1, %c1_i32_17 : i32
    %c0_18 = arith.constant 0 : index
    %41 = arith.index_cast %40 : i32 to index
    %c0_19 = arith.constant 0 : index
    %42 = vector.load %arg4[%c0_18, %41, %c0_19] : memref<1x18x128xf32, #tpu.memory_space<vmem>>, vector<1x16x128xf32>
    %43 = vector.shape_cast %42 : vector<1x16x128xf32> to vector<16x128xf32>
    %44 = arith.addf %39, %43 : vector<16x128xf32>
    %cst_20 = arith.constant 0.707106769 : f32
    %45 = vector.broadcast %cst_20 : f32 to vector<16x128xf32>
    %46 = arith.mulf %44, %45 : vector<16x128xf32>
    %c0_21 = arith.constant 0 : index
    %c0_22 = arith.constant 0 : index
    %c0_23 = arith.constant 0 : index
    %47 = vector.load %arg7[%c0_21, %c0_22, %c0_23] : memref<1x16x128xf32, #tpu.memory_space<vmem>>, vector<1x16x128xf32>
    %48 = vector.shape_cast %47 : vector<1x16x128xf32> to vector<16x128xf32>
    %49 = vector.shape_cast %46 : vector<16x128xf32> to vector<1x16x128xf32>
    tpu.vector_store %arg7[%c0_21, %c0_22, %c0_23], %49 {strides = array<i32>} : memref<1x16x128xf32, #tpu.memory_space<vmem>>, vector<1x16x128xf32>,
    return
  }
  func.func @transform_0(%arg0: i32, %arg1: i32, %arg2: i32) -> (i32, i32, i32) {
    %c0_i32 = arith.constant 0 : i32
    %c0_i32_0 = arith.constant 0 : i32
    %c0_i32_1 = arith.constant 0 : i32
    return %arg0, %c0_i32, %c0_i32_0 : i32, i32, i32
  }
  func.func @transform_1(%arg0: i32, %arg1: i32, %arg2: i32) -> (i32, i32, i32) {
    %c0_i32 = arith.constant 0 : i32
    %c0_i32_0 = arith.constant 0 : i32
    return %arg0, %c0_i32, %arg1 : i32, i32, i32
  }
  func.func @transform_2(%arg0: i32, %arg1: i32, %arg2: i32) -> (i32, i32, i32) {
    %c0_i32 = arith.constant 0 : i32
    %c0_i32_0 = arith.constant 0 : i32
    %c0_i32_1 = arith.constant 0 : i32
    return %c0_i32, %c0_i32_0, %arg1 : i32, i32, i32
  }
  func.func @transform_3(%arg0: i32, %arg1: i32, %arg2: i32) -> (i32, i32) {
    %c0_i32 = arith.constant 0 : i32
    %c0_i32_0 = arith.constant 0 : i32
    return %c0_i32, %arg1 : i32, i32
  }
  func.func @transform_4(%arg0: i32, %arg1: i32, %arg2: i32) -> (i32, i32, i32) {
    %c0_i32 = arith.constant 0 : i32
    return %arg0, %arg2, %arg1 : i32, i32, i32
  }
}

</mosaic_0001>

<bundles_post_ra>
// kernel: encoder_conv_forward.1
= control target key start
LH: loop header
LB: loop body
LE: loop exit
PB: predicated region body
PF: predicated region fallthrough
CT: control target
= control target key end

     0   :  { %9 = vsyncpa [#allocation3], 0  ;;  %s1783_s0 = inlined_call_operand.vmem [shape: f32[2,18,128], index: 0, kind: input, shape index: {}, may-alias: {0,1}]   ;;  %s1784_s1 = inlined_call_operand.vmem [shape: f32[2,18,128], index: 1, kind: input, shape index: {}, may-alias: {0,1}]   ;;  %s1785_s2 = inlined_call_operand.vmem [shape: bf16[3,128,256], index: 2, kind: input, shape index: {}]   ;;  %s1786_s3 = inlined_call_operand.vmem [shape: f32[1,256], index: 3, kind: input, shape index: {}]   ;;  %s1787_s4 = inlined_call_operand.hbm [shape: f32[2,16,128], index: 4, kind: output, shape index: {}]  }
   0x1   :  { %11 = vsyncpa [#allocation3 + $0x1], 0  ;;  %s1369_s15 = smov 0   ;;  %s1371_s16 = smov 0  }
   0x2   :  { %s1373_s17 = smov 0   ;;  %s1375_s18 = smov 0  }
   0x3   :  { %s1377_s19 = smov 0   ;;  %s1379_s20 = smov 0  }
   0x4 LB: > { %s900_s21 = sadd.s32 4294967295, %s1340_s20   ;;  %s901_s22 = sadd.s32 4294967294, %s1340_s20   ;;  %s1340_s20 = sphi %s1379_s20, %s17_s20   ;;  %s1336_s19 = sphi %s1377_s19, %s1794_s19   ;;  %s1332_s18 = sphi %s1375_s18, %s1793_s18   ;;  %s1328_s17 = sphi %s1373_s17, %s1792_s17   ;;  %s1324_s16 = sphi %s1371_s16, %s1791_s16   ;;  %s1320_s15 = sphi %s1369_s15, %s1790_s15  }
   0x5   : > { %s36_s23 = sadd.s32 1, %s1336_s19  ;;  %s153_s24 = sadd.s32 1, %s1328_s17 }
   0x6   : > { %p38_p0 = scmp.ge.s32.totalorder %s36_s23, 2  ;;  %p163_p1 = scmp.ne.s32.totalorder %s1328_s17, %s1324_s16 }
   0x7   : > { %p164_p2 = scmp.eq.s32.totalorder %s900_s21, 1  ;;  %p169_p3 = scmp.ne.s32.totalorder %s1324_s16, %s1320_s15 }
   0x8   : > { %s1796_s23 = smov (%p38_p0, %s36_s23), 0  ;;  %p170_p5 = scmp.eq.s32.totalorder %s901_s22, 1 }
   0x9   : > { %p1409_p4 = por %p164_p2, %p163_p1  ;;  %s146_s26 = ssub.s32 %s1336_s19, %s1796_s23 }
   0xa   : > { %p906_p6 = scmp.ge.s32.totalorder %s1340_s20, 1  ;;  %p151_p7 = scmp.eq.s32.totalorder %s146_s26, 0 }
   0xb   : > { %p1416_p8 = por %p170_p5, %p169_p3  ;;  %p224_p9 = scmp.lt.s32.totalorder %s1340_s20, 3 }
   0xc   : > { %s1422_s28 = scalar_select %p151_p7, %s1328_s17, %s153_s24  }
   0xd   : > { %p225_p10 = pnand %p906_p6, %p224_p9 }
   0xe   : > { %p267_p11 = scmp.lt.s32.totalorder (!%p225_p10), %s1332_s18, 1  ;;  %s264_s29 = sand.u32 (!%p225_p10), 1, %s1324_s16  }
   0xf   : > { %228 = sbr.rel (%p225_p10) target bundleno = 260 (0x104), region = 36  ;;  %s749_s9 = scalar_lea.sflag (!%p225_p10), [#allocation3], %s264_s29 }
  0x14   : > { %v1161_v0 = vld [vmem:[%s1785_s2 + $0x74] sm:$0xf]  ;;  %v970_v1 = vld [vmem:[%s1785_s2 + $0x78] sm:$0xf0]  ;;  %v1159_v5 = vld [vmem:[%s1785_s2 + $0x64] sm:$0xf] }
  0x15   : > { %v1177_v2 = vld [vmem:[%s1785_s2 + $0xf4] sm:$0xf]  ;;  %v973_v3 = vor.u32 %v1161_v0, %v970_v1  ;;  %v1052_v4 = vld [vmem:[%s1785_s2 + $0xf8] sm:$0xf0]  ;;  %v962_v6 = vld [vmem:[%s1785_s2 + $0x68] sm:$0xf0] }
  0x16   : > { %v1055_v7 = vor.u32 %v1177_v2, %v1052_v4  ;;  %v1175_v8 = vld [vmem:[%s1785_s2 + $0xe4] sm:$0xf]  ;;  %v1044_v9 = vld [vmem:[%s1785_s2 + $0xe8] sm:$0xf0]  ;;  %v968_v10 = vld [vmem:[%s1785_s2 + $0x70] sm:$0xf]  ;;  %v965_v11 = vor.u32 %v1159_v5, %v962_v6 }
  0x17   : > { %413 = vmatpush.bf16.msra.mxu1 %v973_v3  ;;  %v1162_v12 = vld [vmem:[%s1785_s2 + $0x74] sm:$0xf0]  ;;  %v1047_v13 = vor.u32 %v1175_v8, %v1044_v9  ;;  %v1157_v15 = vld [vmem:[%s1785_s2 + $0x54] sm:$0xf]  ;;  %v954_v16 = vld [vmem:[%s1785_s2 + $0x58] sm:$0xf0] }
  0x18   : > { %547 = vmatpush.bf16.msra.mxu3 %v1055_v7  ;;  %v969_v14 = vor.u32 %v1162_v12, %v968_v10  ;;  %v960_v17 = vld [vmem:[%s1785_s2 + $0x60] sm:$0xf]  ;;  %v1173_v18 = vld [vmem:[%s1785_s2 + $0xd4] sm:$0xf]  ;;  %v1036_v19 = vld [vmem:[%s1785_s2 + $0xd8] sm:$0xf0]  ;;  %v957_v22 = vor.u32 %v1157_v15, %v954_v16 }
  0x19   : > { %v1160_v20 = vld [vmem:[%s1785_s2 + $0x64] sm:$0xf0]  ;;  %v952_v23 = vld [vmem:[%s1785_s2 + $0x50] sm:$0xf]  ;;  %v1158_v24 = vld [vmem:[%s1785_s2 + $0x54] sm:$0xf0]  ;;  %v1039_v25 = vor.u32 %v1173_v18, %v1036_v19 }
  0x1a   : > { %399 = vmatpush.bf16.msra.mxu0 %v969_v14  ;;  %v961_v21 = vor.u32 %v1160_v20, %v960_v17  ;;  %v1155_v26 = vld [vmem:[%s1785_s2 + $0x44] sm:$0xf]  ;;  %v946_v27 = vld [vmem:[%s1785_s2 + $0x48] sm:$0xf0]  ;;  %v953_v30 = vor.u32 %v1158_v24, %v952_v23  ;;  %v944_v32 = vld [vmem:[%s1785_s2 + $0x40] sm:$0xf] }
  0x1b   : > { %414 = vmatpush.bf16.msra.mxu1 %v965_v11  ;;  %v1171_v28 = vld [vmem:[%s1785_s2 + $0xc4] sm:$0xf]  ;;  %v1028_v29 = vld [vmem:[%s1785_s2 + $0xc8] sm:$0xf0]  ;;  %v949_v31 = vor.u32 %v1155_v26, %v946_v27  ;;  %v1156_v33 = vld [vmem:[%s1785_s2 + $0x44] sm:$0xf0] }
  0x1c   : > { %548 = vmatpush.bf16.msra.mxu3 %v1047_v13  ;;  %v1031_v34 = vor.u32 %v1171_v28, %v1028_v29  ;;  %v1153_v35 = vld [vmem:[%s1785_s2 + $0x34] sm:$0xf]  ;;  %v938_v36 = vld [vmem:[%s1785_s2 + $0x38] sm:$0xf0]  ;;  %v945_v39 = vor.u32 %v1156_v33, %v944_v32  ;;  %v1050_v40 = vld [vmem:[%s1785_s2 + $0xf0] sm:$0xf] }
  0x1d   : > { %v1169_v37 = vld [vmem:[%s1785_s2 + $0xb4] sm:$0xf]  ;;  %v1020_v38 = vld [vmem:[%s1785_s2 + $0xb8] sm:$0xf0]  ;;  %v1178_v41 = vld [vmem:[%s1785_s2 + $0xf4] sm:$0xf0]  ;;  %v941_v42 = vor.u32 %v1153_v35, %v938_v36 }
  0x1e   : > { %400 = vmatpush.bf16.msra.mxu0 %v961_v21  ;;  %v1151_v43 = vld [vmem:[%s1785_s2 + $0x24] sm:$0xf]  ;;  %v936_v44 = vld [vmem:[%s1785_s2 + $0x30] sm:$0xf]  ;;  %v1154_v45 = vld [vmem:[%s1785_s2 + $0x34] sm:$0xf0]  ;;  %v1051_v46 = vor.u32 %v1178_v41, %v1050_v40  ;;  %v1023_v47 = vor.u32 %v1169_v37, %v1020_v38 }
  0x1f   : > { %415 = vmatpush.bf16.msra.mxu1 %v957_v22  ;;  %v930_v48 = vld [vmem:[%s1785_s2 + $0x28] sm:$0xf0]  ;;  %v1167_v49 = vld [vmem:[%s1785_s2 + $0xa4] sm:$0xf]  ;;  %v1042_v51 = vld [vmem:[%s1785_s2 + $0xe0] sm:$0xf]  ;;  %v937_v53 = vor.u32 %v1154_v45, %v936_v44 }
  0x20   : > { %549 = vmatpush.bf16.msra.mxu3 %v1039_v25  ;;  %v1012_v50 = vld [vmem:[%s1785_s2 + $0xa8] sm:$0xf0]  ;;  %533 = vmatpush.bf16.msra.mxu2 %v1051_v46  ;;  %v1176_v52 = vld [vmem:[%s1785_s2 + $0xe4] sm:$0xf0]  ;;  %v928_v54 = vld [vmem:[%s1785_s2 + $0x20] sm:$0xf]  ;;  %v933_v56 = vor.u32 %v1151_v43, %v930_v48 }
  0x21   : > { %s1543_s24 = scalar_select %p267_p11, %s1332_s18, 1  ;;  %v1043_v55 = vor.u32 %v1176_v52, %v1042_v51  ;;  %v1152_v57 = vld [vmem:[%s1785_s2 + $0x24] sm:$0xf0]  ;;  %v1034_v58 = vld [vmem:[%s1785_s2 + $0xd0] sm:$0xf]  ;;  %v1015_v60 = vor.u32 %v1167_v49, %v1012_v50 }
  0x22   : > { %401 = vmatpush.bf16.msra.mxu0 %v953_v30  ;;  %v1174_v59 = vld [vmem:[%s1785_s2 + $0xd4] sm:$0xf0]  ;;  %v1149_v61 = vld [vmem:[%s1785_s2 + $0x14] sm:$0xf]  ;;  %v922_v62 = vld [vmem:[%s1785_s2 + $0x18] sm:$0xf0]  ;;  %v929_v2 = vor.u32 %v1152_v57, %v928_v54 }
  0x23   : > { %416 = vmatpush.bf16.msra.mxu1 %v949_v31  ;;  %v1165_v63 = vld [vmem:[%s1785_s2 + $0x94] sm:$0xf]  ;;  %v1004_v0 = vld [vmem:[%s1785_s2 + $0x98] sm:$0xf0]  ;;  %s1196_s22 = smul.u32 24, %s1543_s24  ;;  %v1035_v1 = vor.u32 %v1174_v59, %v1034_v58  ;;  %v925_v5 = vor.u32 %v1149_v61, %v922_v62  ;;  %s907_s24 = sshll.u32 %s264_s29, 4 }
  0x24   : > { %550 = vmatpush.bf16.msra.mxu3 %v1031_v34  ;;  %534 = vmatpush.bf16.msra.mxu2 %v1043_v55  ;;  %v1026_v3 = vld [vmem:[%s1785_s2 + $0xc0] sm:$0xf]  ;;  %v1172_v4 = vld [vmem:[%s1785_s2 + $0xc4] sm:$0xf0]  ;;  %v1147_v6 = vld [vmem:[%s1785_s2 + $0x4] sm:$0xf]  ;;  %v1007_v9 = vor.u32 %v1165_v63, %v1004_v0 }
  0x25   : > { %v920_v7 = vld [vmem:[%s1785_s2 + $0x10] sm:$0xf]  ;;  %v1150_v8 = vld [vmem:[%s1785_s2 + $0x14] sm:$0xf0]  ;;  %v914_v10 = vld [vmem:[%s1785_s2 + $0x8] sm:$0xf0]  ;;  %s1602_s10 = scalar_lea.vmem %s1783_s0, %s1196_s22  ;;  %v1027_v16 = vor.u32 %v1172_v4, %v1026_v3  ;;  %s1738_s26 = scalar_lea.vmem %s1784_s1, %s1196_s22 }
  0x26   : > { %402 = vmatpush.bf16.msra.mxu0 %v945_v39  ;;  %v1163_v11 = vld [vmem:[%s1785_s2 + $0x84] sm:$0xf]  ;;  %v996_v12 = vld [vmem:[%s1785_s2 + $0x88] sm:$0xf0]  ;;  %v1193_v13 = vld [vmem:[%s1785_s2 + $0x174] sm:$0xf]  ;;  %v921_v17 = vor.u32 %v1150_v8, %v920_v7  ;;  %v917_v21 = vor.u32 %v1147_v6, %v914_v10 }
  0x27   : > { %417 = vmatpush.bf16.msra.mxu1 %v941_v42  ;;  %v1134_v14 = vld [vmem:[%s1785_s2 + $0x178] sm:$0xf0]  ;;  %v912_v15 = vld [vmem:[%s1785_s2] sm:$0xf]  ;;  %v1148_v18 = vld [vmem:[%s1785_s2 + $0x4] sm:$0xf0]  ;;  %v999_v25 = vor.u32 %v1163_v11, %v996_v12 }
  0x28   : > { %551 = vmatpush.bf16.msra.mxu3 %v1023_v47  ;;  %535 = vmatpush.bf16.msra.mxu2 %v1035_v1  ;;  %v1018_v19 = vld [vmem:[%s1785_s2 + $0xb0] sm:$0xf]  ;;  %v1170_v20 = vld [vmem:[%s1785_s2 + $0xb4] sm:$0xf0]  ;;  %v300_v22 = vld [vmem:[%s1602_s10] sm:$0xff]  ;;  %v1137_v26 = vor.u32 %v1193_v13, %v1134_v14  ;;  %v913_v33 = vor.u32 %v1148_v18, %v912_v15  ;;  %s1195_s22 = sshll.u32 %s1332_s18, 4 }
  0x29   : > { %v301_v23 = vld [vmem:[%s1602_s10 + $0x8] sm:$0xff]  ;;  %v1132_v24 = vld [vmem:[%s1785_s2 + $0x170] sm:$0xf]  ;;  %v1194_v29 = vld [vmem:[%s1785_s2 + $0x174] sm:$0xf0]  ;;  %v1019_v32 = vor.u32 %v1170_v20, %v1018_v19  ;;  %s763_s6 = scalar_lea.hbm %s1787_s4, %s1195_s22  ;;  %s266_s7 = scalar_lea.vmem [#allocation2], %s907_s24 }
  0x2a   : > { %403 = vmatpush.bf16.msra.mxu0 %v937_v53  ;;  %v974_v27 = vld [vmem:[%s1602_s10 + $0x1] sm:$0xff]  ;;  %v975_v28 = vld [vmem:[%s1602_s10 + $0x9] sm:$0xff]  ;;  %v302_v34 = vpack.c.bf16 %v301_v23, %v300_v22  ;;  %v1133_v38 = vor.u32 %v1194_v29, %v1132_v24  ;;  %v1189_v42 = vld [vmem:[%s1785_s2 + $0x154] sm:$0xf]  ;;  %s764_s18 = sshll.u32 %s266_s7, 4  ;;  %s766_s8 = sshll.u32 %s763_s6, 4  ;;  %s765_s18 = int_to_ptr.vmem [resolvable:$true] %s764_s18  ;;  %s767_s8 = int_to_ptr.hbm [resolvable:$true] %s766_s8 }
  0x2b   : > { %418 = vmatpush.bf16.msra.mxu1 %v933_v56  ;;  %v1191_v30 = vld [vmem:[%s1785_s2 + $0x164] sm:$0xf]  ;;  %v1126_v31 = vld [vmem:[%s1785_s2 + $0x168] sm:$0xf0]  ;;  %v1010_v35 = vld [vmem:[%s1785_s2 + $0xa0] sm:$0xf]  ;;  %v435_v37 = vpack.c.bf16 %v975_v28, %v974_v27 }
  0x2c   : > { %552 = vmatpush.bf16.msra.mxu3 %v1015_v60  ;;  %536 = vmatpush.bf16.msra.mxu2 %v1027_v16  ;;  %v1168_v36 = vld [vmem:[%s1785_s2 + $0xa4] sm:$0xf0]  ;;  %v1129_v39 = vor.u32 %v1191_v30, %v1126_v31  ;;  %v1124_v40 = vld [vmem:[%s1785_s2 + $0x160] sm:$0xf]  ;;  %v1118_v43 = vld [vmem:[%s1785_s2 + $0x158] sm:$0xf0] }
  0x2d   : > { %v1192_v41 = vld [vmem:[%s1785_s2 + $0x164] sm:$0xf0]  ;;  %v1011_v44 = vor.u32 %v1168_v36, %v1010_v35  ;;  %v1002_v45 = vld [vmem:[%s1785_s2 + $0x90] sm:$0xf]  ;;  %v1166_v46 = vld [vmem:[%s1785_s2 + $0x94] sm:$0xf0]  ;;  %v1121_v48 = vor.u32 %v1189_v42, %v1118_v43 }
  0x2e   : > { %404 = vmatpush.bf16.msra.mxu0 %v929_v2  ;;  %v1125_v47 = vor.u32 %v1192_v41, %v1124_v40  ;;  %v1116_v49 = vld [vmem:[%s1785_s2 + $0x150] sm:$0xf]  ;;  %v1190_v50 = vld [vmem:[%s1785_s2 + $0x154] sm:$0xf0]  ;;  %v1187_v51 = vld [vmem:[%s1785_s2 + $0x144] sm:$0xf]  ;;  %v1003_v53 = vor.u32 %v1166_v46, %v1002_v45 }
  0x2f   : > { %419 = vmatpush.bf16.msra.mxu1 %v925_v5  ;;  %v1110_v52 = vld [vmem:[%s1785_s2 + $0x148] sm:$0xf0]  ;;  %v994_v54 = vld [vmem:[%s1785_s2 + $0x80] sm:$0xf]  ;;  %v1164_v55 = vld [vmem:[%s1785_s2 + $0x84] sm:$0xf0]  ;;  %v1117_v56 = vor.u32 %v1190_v50, %v1116_v49 }
  0x30   : > { %553 = vmatpush.bf16.msra.mxu3 %v1007_v9  ;;  %537 = vmatpush.bf16.msra.mxu2 %v1019_v32  ;;  %v1113_v57 = vor.u32 %v1187_v51, %v1110_v52  ;;  %v1108_v58 = vld [vmem:[%s1785_s2 + $0x140] sm:$0xf]  ;;  %v1188_v59 = vld [vmem:[%s1785_s2 + $0x144] sm:$0xf0]  ;;  %v1185_v60 = vld [vmem:[%s1785_s2 + $0x134] sm:$0xf]  ;;  %v995_v62 = vor.u32 %v1164_v55, %v994_v54 }
  0x31   : > { %v1102_v61 = vld [vmem:[%s1785_s2 + $0x138] sm:$0xf0]  ;;  %v1109_v63 = vor.u32 %v1188_v59, %v1108_v58  ;;  %v1100_v1 = vld [vmem:[%s1785_s2 + $0x130] sm:$0xf]  ;;  %v1186_v2 = vld [vmem:[%s1785_s2 + $0x134] sm:$0xf0] }
  0x32   : > { %405 = vmatpush.bf16.msra.mxu0 %v921_v17  ;;  %v1105_v0 = vor.u32 %v1185_v60, %v1102_v61  ;;  %v1183_v3 = vld [vmem:[%s1785_s2 + $0x124] sm:$0xf]  ;;  %v1094_v4 = vld [vmem:[%s1785_s2 + $0x128] sm:$0xf0]  ;;  %v1101_v5 = vor.u32 %v1186_v2, %v1100_v1  ;;  %v1092_v7 = vld [vmem:[%s1785_s2 + $0x120] sm:$0xf] }
  0x33   : > { %420 = vmatpush.bf16.msra.mxu1 %v917_v21  ;;  %v1097_v6 = vor.u32 %v1183_v3, %v1094_v4  ;;  %v1184_v8 = vld [vmem:[%s1785_s2 + $0x124] sm:$0xf0]  ;;  %v1181_v9 = vld [vmem:[%s1785_s2 + $0x114] sm:$0xf]  ;;  %v1086_v10 = vld [vmem:[%s1785_s2 + $0x118] sm:$0xf0] }
  0x34   : > { %554 = vmatpush.bf16.msra.mxu3 %v999_v25  ;;  %538 = vmatpush.bf16.msra.mxu2 %v1011_v44  ;;  %v1093_v11 = vor.u32 %v1184_v8, %v1092_v7  ;;  %v1089_v12 = vor.u32 %v1181_v9, %v1086_v10  ;;  %v1084_v13 = vld [vmem:[%s1785_s2 + $0x110] sm:$0xf]  ;;  %v1182_v14 = vld [vmem:[%s1785_s2 + $0x114] sm:$0xf0]  ;;  %v1179_v15 = vld [vmem:[%s1785_s2 + $0x104] sm:$0xf] }
  0x35   : > { %v1078_v16 = vld [vmem:[%s1785_s2 + $0x108] sm:$0xf0]  ;;  %v1056_v17 = vld [vmem:[%s1602_s10 + $0x2] sm:$0xff]  ;;  %v1085_v18 = vor.u32 %v1182_v14, %v1084_v13  ;;  %s1276_s11 = sshra.s32 %s767_s8, 4  ;;  %s1277_s11 = int_to_ptr.hbm [resolvable:$true] %s1276_s11 }
  0x36   : > { %406 = vmatpush.bf16.msra.mxu0 %v913_v33  ;;  %421 = vmatmul.bf16.vlgmr.msra.gmra.mxu1 %v302_v34  ;;  %v1081_v19 = vor.u32 %v1179_v15, %v1078_v16  ;;  %v1057_v20 = vld [vmem:[%s1602_s10 + $0xa] sm:$0xff]  ;;  %v1076_v21 = vld [vmem:[%s1785_s2 + $0x100] sm:$0xf]  ;;  %s1278_s12 = scalar_lea.hbm %s1277_s11, 16  ;;  %s1282_s10 = scalar_lea.hbm %s1787_s4, 32 }
  0x37   : > { %681 = vmatpush.bf16.msrb.mxu1 %v1137_v26  ;;  %555 = vmatmul.bf16.vlgmr.msra.gmra.mxu3 %v435_v37  ;;  %v1180_v22 = vld [vmem:[%s1785_s2 + $0x104] sm:$0xf0]  ;;  %v569_v23 = vpack.c.bf16 %v1057_v20, %v1056_v17  ;;  %v293_v26 = vld [vmem:[%s1786_s3] sm:$0x3]  ;;  %p1279_p12 = scmp.ne.s32.totalorder %s1277_s11, %s1278_s12  ;;  %p1283_p1 = scmp.lt.s32.totalorder %s1277_s11, %s1787_s4 }
  0x38   : > { %539 = vmatpush.bf16.msra.mxu2 %v1003_v53  ;;  %v1077_v24 = vor.u32 %v1180_v22, %v1076_v21  ;;  %v296_v27 = vperm.slane %v293_v26, 1  ;;  %v295_v45 = vperm.slane %v293_v26, 0  ;;  %v1140_v3 = vld [vmem:[%s1738_s26 + $0x1] sm:$0xff]  ;;  %p1284_p2 = scmp.lt.s32.totalorder %s1282_s10, %s1278_s12 }
  0x39   : > { %407 = vmatmul.bf16.vlgmr.msra.gmra.mxu0 %v302_v34  ;;  %p1280_p13 = pnand %p1279_p12, %p1409_p4 }
  0x3a   : > { %667 = vmatpush.bf16.msrb.mxu0 %v1133_v38  ;;  %p1285_p3 = por %p1284_p2, %p1283_p1 }
  0x3b   : > { %682 = vmatpush.bf16.msrb.mxu1 %v1129_v39  ;;  %p1281_p0 = pneg %p1280_p13 }
  0x3c   : > { %540 = vmatpush.bf16.msra.mxu2 %v995_v62 }
  0x3d   : > { %p1286_p5 = pnand %p1285_p3, %p1281_p0 }
  0x3e   : > { %668 = vmatpush.bf16.msrb.mxu0 %v1125_v47 }
  0x3f   : > { %683 = vmatpush.bf16.msrb.mxu1 %v1121_v48  ;;  %541 = vmatmul.bf16.vlgmr.msra.gmra.mxu2 %v435_v37 }
  0x42   : > { %669 = vmatpush.bf16.msrb.mxu0 %v1117_v56 }
  0x43   : > { %684 = vmatpush.bf16.msrb.mxu1 %v1113_v57 }
  0x46   : > { %670 = vmatpush.bf16.msrb.mxu0 %v1109_v63 }
  0x47   : > { %685 = vmatpush.bf16.msrb.mxu1 %v1105_v0 }
  0x4a   : > { %671 = vmatpush.bf16.msrb.mxu0 %v1101_v5 }
  0x4b   : > { %686 = vmatpush.bf16.msrb.mxu1 %v1097_v6 }
  0x4e   : > { %672 = vmatpush.bf16.msrb.mxu0 %v1093_v11 }
  0x4f   : > { %687 = vmatpush.bf16.msrb.mxu1 %v1089_v12 }
  0x52   : > { %673 = vmatpush.bf16.msrb.mxu0 %v1085_v18  ;;  %v1141_v18 = vld [vmem:[%s1738_s26 + $0x9] sm:$0xff] }
  0x53   : > { %688 = vmatpush.bf16.msrb.mxu1 %v1081_v19 }
  0x56   : > { %689 = vmatmul.bf16.vlgmr.msrb.gmra.mxu1 %v569_v23  ;;  %674 = vmatpush.bf16.msrb.mxu0 %v1077_v24 }
  0x59   : > { %675 = vmatmul.bf16.vlgmr.msrb.gmra.mxu0 %v569_v23 }
  0xb3   : > { %v422_v25 = vpop.f32.mrf.mxu1 }
  0xb4   : > { %v428_v30 = vadd.f32 %v422_v25, %v296_v27 }
  0xb6   : > { %v408_v37 = vpop.f32.mrf.mxu0 }
  0xb7   : > { %v427_v50 = vadd.f32 %v408_v37, %v295_v45 }
  0xba   : > { %v556_v29 = vpop.f32.mrf.mxu3 }
  0xbb   : > { %v424_v28 = vpop.f32.mrf.mxu1  ;;  %v562_v31 = vadd.f32 %v556_v29, %v428_v30 }
  0xbc   : > { %v430_v34 = vadd.f32 %v424_v28, %v296_v27 }
  0xbe   : > { %v410_v44 = vpop.f32.mrf.mxu0 }
  0xbf   : > { %v429_v60 = vadd.f32 %v410_v44, %v295_v45 }
  0xc2   : > { %v558_v36 = vpop.f32.mrf.mxu3  ;;  %v542_v47 = vpop.f32.mrf.mxu2 }
  0xc3   : > { %v564_v38 = vadd.f32 %v558_v36, %v430_v34  ;;  %v561_v55 = vadd.f32 %v542_v47, %v427_v50 }
  0xca   : > { %v544_v0 = vpop.f32.mrf.mxu2 }
  0xcb   : > { %v563_v6 = vadd.f32 %v544_v0, %v429_v60 }
  0xd3   : > { %v690_v32 = vpop.f32.mrf.mxu1 }
  0xd4   : > { %v696_v33 = vadd.f32 %v690_v32, %v562_v31 }
  0xd6   : > { %v1138_v35 = vmul.f32 -1.442695, %v696_v33  ;;  %v676_v53 = vpop.f32.mrf.mxu0 }
  0xd7   : > { %v695_v62 = vadd.f32 %v676_v53, %v561_v55 }
  0xd8   : > { %1254 = vpow2.f32 %v1138_v35 }
  0xdb   : > { %v692_v39 = vpop.f32.mrf.mxu1 }
  0xdc   : > { %v698_v40 = vadd.f32 %v692_v39, %v564_v38 }
  0xde   : > { %v1255_v41 = vpop.eup %1254  ;;  %v1139_v42 = vmul.f32 -1.442695, %v698_v40  ;;  %v678_v11 = vpop.f32.mrf.mxu0 }
  0xdf   : > { %v705_v43 = vadd.f32 1.0, %v1255_v41  ;;  %v697_v15 = vadd.f32 %v678_v11, %v563_v6 }
  0xe0   : > { %1256 = vpow2.f32 %v1139_v42 }
  0xe1   : > { %1258 = vrcp.f32 %v705_v43  ;;  %v718_v54 = vand.u32 2147483648, %v705_v43  ;;  %v716_v57 = vand.u32 2147483647, %v705_v43  ;;  %vm712_vm1 = vweird.f32 %v705_v43 }
  0xe3   : > { %v719_v61 = vor.u32 1.1754944e-38, %v718_v54  ;;  %vm717_vm3 = vcmp.eq.f32.partialorder %v716_v57, 8.507059e+37 }
  0xe6   : > { %v1257_v46 = vpop.eup %1256 }
  0xe7   : > { %v1259_v48 = vpop.eup %1258  ;;  %v706_v49 = vadd.f32 1.0, %v1257_v46 }
  0xe8   : > { %v708_v51 = vmul.f32 %v1259_v48, %v705_v43  ;;  %vm713_vm0 = vweird.f32 %v1259_v48 }
  0xe9   : > { %1260 = vrcp.f32 %v706_v49  ;;  %vm714_vm2 = vmor %vm712_vm1, %vm713_vm0  ;;  %v733_v7 = vand.u32 2147483648, %v706_v49  ;;  %v731_v10 = vand.u32 2147483647, %v706_v49  ;;  %vm727_vm5 = vweird.f32 %v706_v49 }
  0xea   : > { %v709_v52 = vsub.f32 1.0, %v708_v51 }
  0xeb   : > { %v734_v14 = vor.u32 1.1754944e-38, %v733_v7  ;;  %vm732_vm7 = vcmp.eq.f32.partialorder %v731_v10, 8.507059e+37 }
  0xec   : > { %v710_v56 = vmul.f32 %v1259_v48, %v709_v52 }
  0xee   : > { %v711_v58 = vadd.f32 %v1259_v48, %v710_v56 }
  0xef   : > { %v1261_v59 = vpop.eup %1260 }
  0xf0   : > { %v715_v63 = vsel %vm714_vm2, %v1259_v48, %v711_v58  ;;  %v723_v1 = vmul.f32 %v1261_v59, %v706_v49  ;;  %vm728_vm4 = vweird.f32 %v1261_v59 }
  0xf1   : > { %v720_v2 = vsel %vm717_vm3, %v719_v61, %v715_v63  ;;  %vm729_vm6 = vmor %vm727_vm5, %vm728_vm4 }
  0xf2   : > { %v737_v4 = vmul.f32 %v720_v2, %v695_v62  ;;  %v724_v5 = vsub.f32 1.0, %v723_v1 }
  0xf4   : > { %v742_v8 = vadd.f32 %v1140_v3, %v737_v4  ;;  %v725_v9 = vmul.f32 %v1261_v59, %v724_v5 }
  0xf6   : > { %v744_v12 = vmul.f32 0.70710677, %v742_v8  ;;  %v726_v13 = vadd.f32 %v1261_v59, %v725_v9 }
  0xf8   : > { %746 = vst [vmem:[%s266_s7] sm:$0xff] %v744_v12  ;;  %v730_v16 = vsel %vm729_vm6, %v1261_v59, %v726_v13 }
  0xf9   : > { %v735_v17 = vsel %vm732_vm7, %v734_v14, %v730_v16 }
  0xfa   : > { %v738_v19 = vmul.f32 %v735_v17, %v697_v15 }
  0xfc   : > { %v743_v20 = vadd.f32 %v1141_v18, %v738_v19 }
  0xfe   : > { %v745_v21 = vmul.f32 0.70710677, %v743_v20 }
 0x100   : > { %747 = vst [vmem:[%s266_s7 + $0x8] sm:$0xff] %v745_v21 }
 0x101   : > { %1289 = shalt.err (!%p1286_p5)
}
 0x102   : > { %s1342_s29 = smov 128   ;;  %s1343_s24 = smov 8  }
 0x103   : > { %1197 = dma.vmem_to_hbm [thread:$0]  (%p1409_p4), %s765_s18, 256, %s767_s8, %s749_s9, %s1342_s29, %s1342_s29, %s1343_s24  }
 0x104 PF: > { %p1203_p6 = scmp.ge.s32.totalorder %s1340_s20, 2  ;;  %s781_s22 = sand.u32 1, %s1320_s15  }
 0x105   : > { %s782_s30 = scalar_lea.sflag [#allocation3], %s781_s22 }
 0x106   : > { %p1200_p7 = pnand %p1203_p6, %p1416_p8 }
 0x108   : > { %p1201_p9 = pneg %p1200_p7 }
 0x10a   : > { %1315 = dma.done.wait (%p1201_p9), %s782_s30, 256  }
 0x10b   : > { %1317 = vsyncadd (%p1201_p9), %s782_s30, 4294967040  ;;  %s17_s20 = sadd.s32 1, %s1340_s20   ;;  %s1790_s15 = smov %s1324_s16 }
 0x10c   : > { %p14_p10 = scmp.ge.s32.totalorder %s17_s20, 4   ;;  %s1791_s16 = smov %s1328_s17 }
 0x10d   : > { %s1792_s17 = smov %s1422_s28  ;;  %s1793_s18 = smov %s1336_s19 }
 0x10e   : > { %s1794_s19 = smov %s1796_s23  ;;  %16 = sbr.rel (!%p14_p10) target bundleno = 4 (0x4), region = 86 }
 0x113   :  { %788 = vsyncpa [#allocation3], 1 }
 0x114   :  { %790 = vsyncpa [#allocation3 + $0x1], 1 }

</bundles_post_ra>
